<compile_context>
chip_gen: v7x
topology: tpu7x:2x2x1
jax: 0.10.0
libtpu: 0.0.40
codegen_flags: <defaults>
</compile_context>

<pallas_src>
import functools

import jax
import jax.numpy as jnp
from jax.experimental import pallas as pl
from jax.experimental.pallas import tpu as pltpu


def _round_up(x, m):
    return (x + m - 1) // m * m


def _actor_kernel(x_ref, w1_ref, b1_ref, w2_ref, b2_ref, w3_ref, b3_ref,
                  out_ref, *, max_actions, n_actions):
    """One batch tile of the two-head actor MLP.

    out_ref is a lane-dense (tb, OUT_PAD) f32 slab:
      lanes [0, n_actions)           -> max_actions * tanh(mean head)
      lanes [n_actions, 2*n_actions) -> softplus(std head)
      lanes [2*n_actions, OUT_PAD)   -> padding (sliced off by the wrapper)
    """
    # Cast the f32 state tile to bf16 in-kernel (no separate wrapper astype pass).
    x = x_ref[...].astype(w1_ref.dtype)

    # Linear(input_dims, fc1) + ReLU : bf16 MXU matmul, f32 accumulate.
    h1 = jnp.dot(x, w1_ref[...], preferred_element_type=jnp.float32) + b1_ref[...]
    h1 = jnp.maximum(h1, 0.0)

    # Linear(fc1, fc2) + ReLU
    h2 = jnp.dot(h1.astype(w2_ref.dtype), w2_ref[...],
                 preferred_element_type=jnp.float32) + b2_ref[...]
    h2 = jnp.maximum(h2, 0.0)

    # Fused two-head Linear(fc2, 2*n_actions), zero-padded to OUT_PAD lanes:
    # one MXU matmul and one unmasked, lane-dense output store per tile.
    raw = jnp.dot(h2.astype(w3_ref.dtype), w3_ref[...],
                  preferred_element_type=jnp.float32) + b3_ref[...]

    # Epilogue stays in f32 (no bf16 VPU/EUP on v5e). Per-lane select of which
    # head's activation applies; with n_actions << 128 the padded slab costs
    # the same number of vregs as the unpadded heads would.
    col = jax.lax.broadcasted_iota(jnp.int32, raw.shape, dimension=1)
    mean_act = max_actions * jnp.tanh(raw)
    # softplus(x) = max(x, 0) + log1p(exp(-|x|))   (matches F.softplus)
    std_act = jnp.maximum(raw, 0.0) + jnp.log1p(jnp.exp(-jnp.abs(raw)))
    out_ref[...] = jnp.where(col < n_actions, mean_act, std_act)


def actor_forward(state, params, *, max_actions, n_actions, block_b=2048):
    """ActorNetwork forward in a single batch-tiled Pallas kernel.

    `params` must come from `prepare_params` (bf16 weights in [in, out] layout,
    fused + lane-padded output head, f32 biases shaped [1, out]).
    Returns (mean, std), each [B, n_actions] float32.
    """
    w1, b1, w2, b2, w3, b3 = params
    B, D = state.shape
    fc1 = w1.shape[1]
    fc2 = w2.shape[1]
    out_pad = w3.shape[1]
    assert w1.shape[0] == D and w2.shape[0] == fc1 and w3.shape[0] == fc2
    assert out_pad % 128 == 0 and out_pad >= 2 * n_actions

    # Batch tiling:
    #  - large batches: >= 2 tiles so ("parallel",) can shard across v7x's two
    #    TensorCores / megacore, tile capped at block_b (fits VMEM everywhere);
    #  - small batches: a single tile (grid-step overhead would dominate).
    if B >= 512:
        tb = min(_round_up(pl.cdiv(B, 2), 16), block_b)
    else:
        tb = _round_up(B, 8)
    b_pad = _round_up(B, tb)

    x = state
    if b_pad != B:
        # Only materialized when B is not tile-aligned; padded rows are wasted
        # compute but sliced off below.
        x = jnp.pad(x, ((0, b_pad - B), (0, 0)))

    grid = (b_pad // tb,)
    kernel = functools.partial(_actor_kernel, max_actions=float(max_actions),
                               n_actions=int(n_actions))

    bytes_in = (x.size * x.dtype.itemsize
                + sum(int(a.size) * a.dtype.itemsize
                      for a in (w1, b1, w2, b2, w3, b3)))
    bytes_out = b_pad * out_pad * 4
    cost = pl.CostEstimate(
        flops=2 * b_pad * (D * fc1 + fc1 * fc2 + fc2 * out_pad),
        transcendentals=3 * b_pad * out_pad,
        bytes_accessed=bytes_in + bytes_out,
    )

    out = pl.pallas_call(
        kernel,
        out_shape=jax.ShapeDtypeStruct((b_pad, out_pad), jnp.float32),
        grid=grid,
        in_specs=[
            pl.BlockSpec((tb, D), lambda i: (i, 0)),       # state tile (pipelined)
            # Weights / biases: constant block index -> DMA'd once, VMEM-resident
            # across all batch tiles. (<300 KB total at fc=256; if the layer
            # widths are ever scaled up, add pipeline_mode=pl.Buffered(1) here
            # to single-buffer them on v7x's 64 MiB VMEM.)
            pl.BlockSpec((D, fc1), lambda i: (0, 0)),      # W1^T (bf16)
            pl.BlockSpec((1, fc1), lambda i: (0, 0)),      # b1   (f32)
            pl.BlockSpec((fc1, fc2), lambda i: (0, 0)),    # W2^T (bf16)
            pl.BlockSpec((1, fc2), lambda i: (0, 0)),      # b2   (f32)
            pl.BlockSpec((fc2, out_pad), lambda i: (0, 0)),  # fused+padded W3^T
            pl.BlockSpec((1, out_pad), lambda i: (0, 0)),    # fused+padded b3
        ],
        out_specs=pl.BlockSpec((tb, out_pad), lambda i: (i, 0)),
        compiler_params=pltpu.CompilerParams(
            dimension_semantics=("parallel",),     # shard batch tiles across cores
            vmem_limit_bytes=32 * 1024 * 1024,     # > v5e's 16 MiB scoped default
        ),
        cost_estimate=cost,
    )(x, w1, b1, w2, b2, w3, b3)

    mean = out[:B, :n_actions]
    std = out[:B, n_actions:2 * n_actions]
    return mean, std


def init_params(key, input_dim, fc1_dims, fc2_dims, n_actions):
    """Deterministic f32 init mimicking nn.Linear default (U(+/- 1/sqrt(fan_in))).
    Weights returned pre-transposed to [in, out]; biases as [1, out]."""
    def linear(key, fan_in, fan_out):
        kw, kb = jax.random.split(key)
        bound = 1.0 / jnp.sqrt(float(fan_in))
        w_t = jax.random.uniform(kw, (fan_in, fan_out), jnp.float32, -bound, bound)
        b = jax.random.uniform(kb, (1, fan_out), jnp.float32, -bound, bound)
        return w_t, b

    k1, k2, k3 = jax.random.split(key, 3)
    w1t, b1 = linear(k1, input_dim, fc1_dims)
    w2t, b2 = linear(k2, fc1_dims, fc2_dims)
    w3t, b3 = linear(k3, fc2_dims, 2 * n_actions)   # columns [0:n]=mean, [n:2n]=std (T.chunk order)
    return (w1t, b1, w2t, b2, w3t, b3)


def prepare_params(params, n_actions, compute_dtype=jnp.bfloat16, out_pad=None):
    """One-time (per optimizer update, NOT per forward) conversion to kernel form:
      * weights cast to bf16 (halves HBM->VMEM DMA bytes),
      * the fused 2*n_actions head zero-padded to a lane-dense multiple of 128
        so the kernel writes one unmasked output slab."""
    w1t, b1, w2t, b2, w3t, b3 = params
    two_n = 2 * n_actions
    if out_pad is None:
        out_pad = max(128, _round_up(two_n, 128))
    w3p = jnp.zeros((w3t.shape[0], out_pad), jnp.float32).at[:, :two_n].set(w3t)
    b3p = jnp.zeros((1, out_pad), jnp.float32).at[:, :two_n].set(b3)
    return (w1t.astype(compute_dtype), b1,
            w2t.astype(compute_dtype), b2,
            w3p.astype(compute_dtype), b3p)


def reference_forward(state, prepared_params, *, max_actions, n_actions):
    """Pure-JAX reference mirroring the kernel's bf16-matmul / f32-accum path."""
    w1, b1, w2, b2, w3, b3 = prepared_params
    x = state.astype(w1.dtype)
    h1 = jnp.maximum(jnp.dot(x, w1, preferred_element_type=jnp.float32) + b1, 0.0)
    h2 = jnp.maximum(jnp.dot(h1.astype(w2.dtype), w2,
                             preferred_element_type=jnp.float32) + b2, 0.0)
    raw = jnp.dot(h2.astype(w3.dtype), w3,
                  preferred_element_type=jnp.float32) + b3
    mean = max_actions * jnp.tanh(raw[:, :n_actions])
    std = jax.nn.softplus(raw[:, n_actions:2 * n_actions])
    return mean, std


if __name__ == "__main__":
    # Small shapes consistent with the module: state [B, input_dim],
    # fc1_dims=fc2_dims=256 (PyTorch defaults), 2*n_actions fused head.
    B = 8
    INPUT_DIM = 32
    FC1 = 256
    FC2 = 256
    N_ACTIONS = 4
    MAX_ACTIONS = 2.0

    key = jax.random.PRNGKey(0)
    k_state, k_params = jax.random.split(key)
    state = jax.random.normal(k_state, (B, INPUT_DIM), jnp.float32)
    params_f32 = init_params(k_params, INPUT_DIM, FC1, FC2, N_ACTIONS)
    params = prepare_params(params_f32, N_ACTIONS)   # one-time bf16 cast + head fuse/pad

    mean, std = actor_forward(state, params,
                              max_actions=MAX_ACTIONS, n_actions=N_ACTIONS)
    jax.block_until_ready((mean, std))

    ref_mean, ref_std = reference_forward(state, params,
                                          max_actions=MAX_ACTIONS,
                                          n_actions=N_ACTIONS)
    assert mean.shape == (B, N_ACTIONS) and std.shape == (B, N_ACTIONS)
    assert jnp.allclose(mean, ref_mean, atol=1e-2, rtol=1e-2)
    assert jnp.allclose(std, ref_std, atol=1e-2, rtol=1e-2)
    assert bool(jnp.all(std >= 0.0))

    # TODO(synk): optimizer / checkpoint I/O / Normal.log_prob from the module
    # are host-side training utilities, not part of the forward pass kernel.
    print("KERNEL_OK")
</pallas_src>

<mosaic_0001>
module attributes {stable_mosaic.version = 11 : i64} {
  func.func @_actor_kernel(%arg0: i32, %arg1: memref<8x32xf32, #tpu.memory_space<vmem>>, %arg2: memref<32x256xbf16, #tpu.memory_space<vmem>>, %arg3: memref<1x256xf32, #tpu.memory_space<vmem>>, %arg4: memref<256x256xbf16, #tpu.memory_space<vmem>>, %arg5: memref<1x256xf32, #tpu.memory_space<vmem>>, %arg6: memref<256x128xbf16, #tpu.memory_space<vmem>>, %arg7: memref<1x128xf32, #tpu.memory_space<vmem>>, %arg8: memref<8x128xf32, #tpu.memory_space<vmem>>) attributes {dimension_semantics = [#tpu.dimension_semantics<parallel>], iteration_bounds = array<i64: 1>, scalar_prefetch = 0 : i64, scratch_operands = 0 : i64, tpu.core_type = #tpu.core_type<tc>, window_params = [{transform_indices = @transform_0, window_bounds = array<i64: 8, 32>}, {pipeline_mode = #tpu.pipeline_mode<synchronous>, transform_indices = @transform_1, window_bounds = array<i64: 32, 256>}, {pipeline_mode = #tpu.pipeline_mode<synchronous>, transform_indices = @transform_2, window_bounds = array<i64: 1, 256>}, {pipeline_mode = #tpu.pipeline_mode<synchronous>, transform_indices = @transform_3, window_bounds = array<i64: 256, 256>}, {pipeline_mode = #tpu.pipeline_mode<synchronous>, transform_indices = @transform_4, window_bounds = array<i64: 1, 256>}, {pipeline_mode = #tpu.pipeline_mode<synchronous>, transform_indices = @transform_5, window_bounds = array<i64: 256, 128>}, {pipeline_mode = #tpu.pipeline_mode<synchronous>, transform_indices = @transform_6, window_bounds = array<i64: 1, 128>}, {transform_indices = @transform_7, window_bounds = array<i64: 8, 128>}]} {
    %c0 = arith.constant 0 : index
    %c0_0 = arith.constant 0 : index
    %0 = vector.load %arg1[%c0, %c0_0] : memref<8x32xf32, #tpu.memory_space<vmem>>, vector<8x32xf32>
    %1 = arith.truncf %0 : vector<8x32xf32> to vector<8x32xbf16>
    %c0_1 = arith.constant 0 : index
    %c0_2 = arith.constant 0 : index
    %2 = vector.load %arg2[%c0_1, %c0_2] : memref<32x256xbf16, #tpu.memory_space<vmem>>, vector<32x256xbf16>
    %cst = arith.constant dense<0.000000e+00> : vector<8x256xf32>
    %3 = tpu.matmul %1, %2, %cst {dimension_numbers = #tpu.dot_dimension_numbers<[1], [0], [0], [1], [0, 0, 1, 1], [], []>} : vector<8x32xbf16>, vector<32x256xbf16>, vector<8x256xf32> -> vector<8x256xf32>
    %c0_3 = arith.constant 0 : index
    %c0_4 = arith.constant 0 : index
    %4 = vector.load %arg3[%c0_3, %c0_4] : memref<1x256xf32, #tpu.memory_space<vmem>>, vector<1x256xf32>
    %5 = vector.broadcast %4 : vector<1x256xf32> to vector<8x256xf32>
    %6 = arith.addf %3, %5 : vector<8x256xf32>
    %cst_5 = arith.constant 0.000000e+00 : f32
    %7 = vector.broadcast %cst_5 : f32 to vector<8x256xf32>
    %8 = arith.maximumf %6, %7 : vector<8x256xf32>
    %9 = arith.truncf %8 : vector<8x256xf32> to vector<8x256xbf16>
    %c0_6 = arith.constant 0 : index
    %c0_7 = arith.constant 0 : index
    %10 = vector.load %arg4[%c0_6, %c0_7] : memref<256x256xbf16, #tpu.memory_space<vmem>>, vector<256x256xbf16>
    %cst_8 = arith.constant dense<0.000000e+00> : vector<8x256xf32>
    %11 = tpu.matmul %9, %10, %cst_8 {dimension_numbers = #tpu.dot_dimension_numbers<[1], [0], [0], [1], [0, 0, 1, 1], [], []>} : vector<8x256xbf16>, vector<256x256xbf16>, vector<8x256xf32> -> vector<8x256xf32>
    %c0_9 = arith.constant 0 : index
    %c0_10 = arith.constant 0 : index
    %12 = vector.load %arg5[%c0_9, %c0_10] : memref<1x256xf32, #tpu.memory_space<vmem>>, vector<1x256xf32>
    %13 = vector.broadcast %12 : vector<1x256xf32> to vector<8x256xf32>
    %14 = arith.addf %11, %13 : vector<8x256xf32>
    %cst_11 = arith.constant 0.000000e+00 : f32
    %15 = vector.broadcast %cst_11 : f32 to vector<8x256xf32>
    %16 = arith.maximumf %14, %15 : vector<8x256xf32>
    %17 = arith.truncf %16 : vector<8x256xf32> to vector<8x256xbf16>
    %c0_12 = arith.constant 0 : index
    %c0_13 = arith.constant 0 : index
    %18 = vector.load %arg6[%c0_12, %c0_13] : memref<256x128xbf16, #tpu.memory_space<vmem>>, vector<256x128xbf16>
    %cst_14 = arith.constant dense<0.000000e+00> : vector<8x128xf32>
    %19 = tpu.matmul %17, %18, %cst_14 {dimension_numbers = #tpu.dot_dimension_numbers<[1], [0], [0], [1], [0, 0, 1, 1], [], []>} : vector<8x256xbf16>, vector<256x128xbf16>, vector<8x128xf32> -> vector<8x128xf32>
    %c0_15 = arith.constant 0 : index
    %c0_16 = arith.constant 0 : index
    %20 = vector.load %arg7[%c0_15, %c0_16] : memref<1x128xf32, #tpu.memory_space<vmem>>, vector<1x128xf32>
    %21 = vector.broadcast %20 : vector<1x128xf32> to vector<8x128xf32>
    %22 = arith.addf %19, %21 : vector<8x128xf32>
    %23 = tpu.iota {dimensions = array<i32: 1>} : vector<8x128xi32>
    %24 = math.tanh %22 : vector<8x128xf32>
    %cst_17 = arith.constant 2.000000e+00 : f32
    %25 = vector.broadcast %cst_17 : f32 to vector<8x128xf32>
    %26 = arith.mulf %25, %24 : vector<8x128xf32>
    %cst_18 = arith.constant 0.000000e+00 : f32
    %27 = vector.broadcast %cst_18 : f32 to vector<8x128xf32>
    %28 = arith.maximumf %22, %27 : vector<8x128xf32>
    %29 = math.absf %22 : vector<8x128xf32>
    %cst_19 = arith.constant 0.000000e+00 : f32
    %30 = vector.broadcast %cst_19 : f32 to vector<8x128xf32>
    %31 = arith.subf %30, %29 : vector<8x128xf32>
    %32 = math.exp %31 : vector<8x128xf32>
    %33 = math.log1p %32 : vector<8x128xf32>
    %34 = arith.addf %28, %33 : vector<8x128xf32>
    %c4_i32 = arith.constant 4 : i32
    %35 = vector.broadcast %c4_i32 : i32 to vector<8x128xi32>
    %36 = arith.cmpi slt, %23, %35 : vector<8x128xi32>
    %37 = arith.select %36, %26, %34 : vector<8x128xi1>, vector<8x128xf32>
    %c0_20 = arith.constant 0 : index
    %c0_21 = arith.constant 0 : index
    %38 = vector.load %arg8[%c0_20, %c0_21] : memref<8x128xf32, #tpu.memory_space<vmem>>, vector<8x128xf32>
    tpu.vector_store %arg8[%c0_20, %c0_21], %37 {strides = array<i32>} : memref<8x128xf32, #tpu.memory_space<vmem>>, vector<8x128xf32>,
    return
  }
  func.func @transform_0(%arg0: i32) -> (i32, i32) {
    %c0_i32 = arith.constant 0 : i32
    %c0_i32_0 = arith.constant 0 : i32
    return %arg0, %c0_i32 : i32, i32
  }
  func.func @transform_1(%arg0: i32) -> (i32, i32) {
    %c0_i32 = arith.constant 0 : i32
    %c0_i32_0 = arith.constant 0 : i32
    %c0_i32_1 = arith.constant 0 : i32
    return %c0_i32, %c0_i32_0 : i32, i32
  }
  func.func @transform_2(%arg0: i32) -> (i32, i32) {
    %c0_i32 = arith.constant 0 : i32
    %c0_i32_0 = arith.constant 0 : i32
    %c0_i32_1 = arith.constant 0 : i32
    return %c0_i32, %c0_i32_0 : i32, i32
  }
  func.func @transform_3(%arg0: i32) -> (i32, i32) {
    %c0_i32 = arith.constant 0 : i32
    %c0_i32_0 = arith.constant 0 : i32
    %c0_i32_1 = arith.constant 0 : i32
    return %c0_i32, %c0_i32_0 : i32, i32
  }
  func.func @transform_4(%arg0: i32) -> (i32, i32) {
    %c0_i32 = arith.constant 0 : i32
    %c0_i32_0 = arith.constant 0 : i32
    %c0_i32_1 = arith.constant 0 : i32
    return %c0_i32, %c0_i32_0 : i32, i32
  }
  func.func @transform_5(%arg0: i32) -> (i32, i32) {
    %c0_i32 = arith.constant 0 : i32
    %c0_i32_0 = arith.constant 0 : i32
    %c0_i32_1 = arith.constant 0 : i32
    return %c0_i32, %c0_i32_0 : i32, i32
  }
  func.func @transform_6(%arg0: i32) -> (i32, i32) {
    %c0_i32 = arith.constant 0 : i32
    %c0_i32_0 = arith.constant 0 : i32
    %c0_i32_1 = arith.constant 0 : i32
    return %c0_i32, %c0_i32_0 : i32, i32
  }
  func.func @transform_7(%arg0: i32) -> (i32, i32) {
    %c0_i32 = arith.constant 0 : i32
    %c0_i32_0 = arith.constant 0 : i32
    return %arg0, %c0_i32 : i32, i32
  }
}

</mosaic_0001>

<bundles_post_ra>
// kernel: tpu_custom_call.1
= control target key start
LH: loop header
LB: loop body
LE: loop exit
PB: predicated region body
PF: predicated region fallthrough
CT: control target
= control target key end

     0   :  { %12 = vsyncpa [#allocation3], 0  ;;  %s1036_s0 = inlined_call_operand.hbm [shape: f32[8,32], index: 0, kind: input, shape index: {}]   ;;  %s1037_s1 = inlined_call_operand.hbm [shape: bf16[32,256], index: 1, kind: input, shape index: {}]   ;;  %s1038_s2 = inlined_call_operand.vmem [shape: f32[1,256], index: 2, kind: input, shape index: {}]   ;;  %s1039_s3 = inlined_call_operand.hbm [shape: bf16[256,256], index: 3, kind: input, shape index: {}]   ;;  %s1040_s4 = inlined_call_operand.vmem [shape: f32[1,256], index: 4, kind: input, shape index: {}]   ;;  %s1041_s5 = inlined_call_operand.hbm [shape: bf16[256,128], index: 5, kind: input, shape index: {}]   ;;  %s1042_s6 = inlined_call_operand.vmem [shape: f32[1,128], index: 6, kind: input, shape index: {}]   ;;  %s1043_s7 = inlined_call_operand.hbm [shape: f32[8,128], index: 7, kind: output, shape index: {}]  }
   0x1   :  { %13 = vsyncpa [#allocation6], 0 }
   0x2   :  { %14 = vsyncpa [#allocation9], 0 }
   0x3   :  { %15 = vsyncpa [#allocation4], 0  ;;  %s911_s24 = smov [#allocation5]   ;;  %s793_s28 = scalar_lea.hbm %s1037_s1, 512 }
   0x4   :  { %s31_s25 = sshll.u32 %s911_s24, 4  ;;  %p794_p0 = scmp.ne.s32.totalorder %s1037_s1, %s793_s28  ;;  %s32_s25 = int_to_ptr.vmem [resolvable:$true] %s31_s25 }
   0x5   :  { %p797_p1 = scmp.lt.u32.totalorder %s793_s28, %s1037_s1 }
   0x7   :  { %p799_p2 = pnand %p797_p1, %p794_p0 }
   0x9   :  { %802 = shalt.err (!%p799_p2)
}
   0xa   :  { %s803_s10 = scalar_lea.vmem %s32_s25, 512  ;;  %p808_p4 = scmp.lt.s32.totalorder %s32_s25, %s32_s25 }
   0xb   :  { %p804_p3 = scmp.ne.s32.totalorder %s32_s25, %s803_s10  ;;  %p809_p5 = scmp.lt.s32.totalorder %s803_s10, %s803_s10 }
   0xd   :  { %p810_p6 = por %p809_p5, %p808_p4 }
   0xf   :  { %p811_p7 = pnand %p810_p6, %p804_p3 }
  0x11   :  { %814 = shalt.err (!%p811_p7)
}
  0x12   :  { %s912_s11 = smov 128   ;;  %s913_s12 = smov 8  }
  0x13   :  { %37 = dma.hbm_to_vmem [thread:$0]  %s1037_s1, 512, %s32_s25, [#allocation6], %s912_s11, %s912_s11, %s913_s12  }
  0x14   :  { %s914_s15 = smov [#allocation2]   ;;  %s915_s17 = smov [#allocation7]  }
  0x15   :  { %s22_s16 = sshll.u32 %s914_s15, 4  ;;  %s45_s18 = sshll.u32 %s915_s17, 4  ;;  %s23_s16 = int_to_ptr.vmem [resolvable:$true] %s22_s16  ;;  %s46_s18 = int_to_ptr.vmem [resolvable:$true] %s45_s18 }
  0x16   :  { %s815_s21 = scalar_lea.hbm %s1036_s0, 128 }
  0x17   :  { %p816_p8 = scmp.ne.s32.totalorder %s1036_s0, %s815_s21  ;;  %p819_p9 = scmp.lt.u32.totalorder %s815_s21, %s1036_s0 }
  0x19   :  { %p821_p10 = pnand %p819_p9, %p816_p8 }
  0x1b   :  { %824 = shalt.err (!%p821_p10)
}
  0x1c   :  { %s825_s1 = scalar_lea.vmem %s23_s16, 128  ;;  %p830_p12 = scmp.lt.s32.totalorder %s23_s16, %s23_s16 }
  0x1d   :  { %p826_p11 = scmp.ne.s32.totalorder %s23_s16, %s825_s1  ;;  %p831_p13 = scmp.lt.s32.totalorder %s825_s1, %s825_s1 }
  0x1f   :  { %p832_p0 = por %p831_p13, %p830_p12 }
  0x21   :  { %p833_p1 = pnand %p832_p0, %p826_p11 }
  0x23   :  { %836 = shalt.err (!%p833_p1)
}
  0x24   :  { %25 = dma.hbm_to_vmem [thread:$0]  %s1036_s0, 128, %s23_s16, [#allocation3]  }
  0x25   :  { %s837_s30 = scalar_lea.hbm %s1039_s3, 4096 }
  0x26   :  { %p838_p2 = scmp.ne.s32.totalorder %s1039_s3, %s837_s30  ;;  %p841_p3 = scmp.lt.u32.totalorder %s837_s30, %s1039_s3 }
  0x28   :  { %p843_p4 = pnand %p841_p3, %p838_p2 }
  0x2a   :  { %846 = shalt.err (!%p843_p4)
}
  0x2b   :  { %s847_s14 = scalar_lea.vmem %s46_s18, 4096  ;;  %p852_p6 = scmp.lt.s32.totalorder %s46_s18, %s46_s18 }
  0x2c   :  { %p848_p5 = scmp.ne.s32.totalorder %s46_s18, %s847_s14  ;;  %p853_p7 = scmp.lt.s32.totalorder %s847_s14, %s847_s14 }
  0x2e   :  { %p854_p8 = por %p853_p7, %p852_p6 }
  0x30   :  { %p855_p9 = pnand %p854_p8, %p848_p5 }
  0x32   :  { %858 = shalt.err (!%p855_p9)
}
  0x33   :  { %51 = dma.hbm_to_vmem [thread:$0]  %s1039_s3, 4096, %s46_s18, [#allocation6], %s912_s11, %s912_s11, %s913_s12  }
  0x34   :  { %s916_s16 = smov [#allocation8]   ;;  %s859_s21 = scalar_lea.hbm %s1041_s5, 2048 }
  0x35   :  { %s59_s17 = sshll.u32 %s916_s16, 4  ;;  %p860_p10 = scmp.ne.s32.totalorder %s1041_s5, %s859_s21  ;;  %s60_s17 = int_to_ptr.vmem [resolvable:$true] %s59_s17 }
  0x36   :  { %p863_p11 = scmp.lt.u32.totalorder %s859_s21, %s1041_s5 }
  0x38   :  { %p865_p12 = pnand %p863_p11, %p860_p10 }
  0x3a   :  { %868 = shalt.err (!%p865_p12)
}
  0x3b   :  { %s869_s1 = scalar_lea.vmem %s60_s17, 2048  ;;  %p874_p0 = scmp.lt.s32.totalorder %s60_s17, %s60_s17 }
  0x3c   :  { %p870_p13 = scmp.ne.s32.totalorder %s60_s17, %s869_s1  ;;  %p875_p1 = scmp.lt.s32.totalorder %s869_s1, %s869_s1 }
  0x3e   :  { %p876_p2 = por %p875_p1, %p874_p0 }
  0x40   :  { %p877_p3 = pnand %p876_p2, %p870_p13 }
  0x42   :  { %880 = shalt.err (!%p877_p3)
}
  0x43   :  { %s917_s3 = smov 64   ;;  %s918_s11 = smov 4  }
  0x44   :  { %65 = dma.hbm_to_vmem [thread:$0]  %s1041_s5, 2048, %s60_s17, [#allocation9], %s917_s3, %s917_s3, %s918_s11  }
  0x45   :  { %903 = dma.done.wait [#allocation3], 128  }
  0x46   :  { %904 = vsyncadd [#allocation3], 4294967168 }
  0x47   :  { %905 = dma.done.wait [#allocation6], 4608  }
  0x48   :  { %906 = vsyncadd [#allocation6], 4294962688 }
  0x49   :  { %907 = dma.done.wait [#allocation9], 2048  }
  0x4a   :  { %908 = vsyncadd [#allocation9], 4294965248  ;;  %v919_v0 = vmov 0   ;;  %v717_v1 = vld [vmem:[#allocation5 + $0x4] ss:$8 sps:$4 sm:$0xff]   ;;  %v81_v5 = vld [vmem:[#allocation2] sm:$0xff]  ;;  %v89_v51 = vlaneseq }
  0x4b   :  { %155 = vmatprep.mubr.bf16.mxu0 %v919_v0  ;;  %v719_v2 = vld [vmem:[#allocation5] ss:$8 sps:$4 sm:$0xff]   ;;  %123 = vmatprep.subr.bf16.mxu0 %v717_v1  ;;  %v720_v3 = vld [vmem:[#allocation5 + $0x14] ss:$8 sps:$4 sm:$0xff]   ;;  %v722_v4 = vld [vmem:[#allocation5 + $0x10] ss:$8 sps:$4 sm:$0xff]   ;;  %v82_v9 = vpack.c.bf16 %v81_v5, %v81_v5 }
  0x4c   :  { %124 = vmatpush1.bf16.msra.mxu0 %v719_v2  ;;  %v723_v6 = vld [vmem:[#allocation7 + $0x4] ss:$8 sps:$4 sm:$0xff]   ;;  %v725_v7 = vld [vmem:[#allocation7] ss:$8 sps:$4 sm:$0xff]   ;;  %v726_v8 = vld [vmem:[#allocation7 + $0x14] ss:$8 sps:$4 sm:$0xff]  }
  0x4d   :  { %125 = vmatprep.subr.bf16.mxu0 %v720_v3  ;;  %372 = vmatprep.subr.bf16.mxu1 %v723_v6  ;;  %v728_v10 = vld [vmem:[#allocation7 + $0x10] ss:$8 sps:$4 sm:$0xff]   ;;  %vm119_vm0 = vcmask 261120   ;;  %v729_v11 = vld [vmem:[#allocation7 + $0x24] ss:$8 sps:$4 sm:$0xff]   ;;  %v90_v52 = vshrl.u32 %v89_v51, 7 }
  0x4e   :  { %373 = vmatpush1.bf16.msra.mxu1 %v725_v7  ;;  %v731_v12 = vld [vmem:[#allocation7 + $0x20] ss:$8 sps:$4 sm:$0xff]   ;;  %v732_v13 = vld [vmem:[#allocation7 + $0x34] ss:$8 sps:$4 sm:$0xff]   ;;  %v734_v14 = vld [vmem:[#allocation7 + $0x30] ss:$8 sps:$4 sm:$0xff]  }
  0x4f   :  { %374 = vmatprep.subr.bf16.mxu1 %v726_v8  ;;  %v735_v15 = vld [vmem:[#allocation7 + $0x44] ss:$8 sps:$4 sm:$0xff]   ;;  %v737_v16 = vld [vmem:[#allocation7 + $0x40] ss:$8 sps:$4 sm:$0xff]   ;;  %v738_v17 = vld [vmem:[#allocation7 + $0x54] ss:$8 sps:$4 sm:$0xff]  }
  0x50   :  { %126 = vmatpush1.bf16.msra.mxu0 %v722_v4  ;;  %v740_v18 = vld [vmem:[#allocation7 + $0x50] ss:$8 sps:$4 sm:$0xff]   ;;  %v741_v19 = vld [vmem:[#allocation7 + $0x64] ss:$8 sps:$4 sm:$0xff]   ;;  %v743_v20 = vld [vmem:[#allocation7 + $0x60] ss:$8 sps:$4 sm:$0xff]  }
  0x51   :  { %v744_v21 = vld [vmem:[#allocation7 + $0x74] ss:$8 sps:$4 sm:$0xff]   ;;  %v746_v22 = vld [vmem:[#allocation7 + $0x70] ss:$8 sps:$4 sm:$0xff]   ;;  %v747_v23 = vld [vmem:[#allocation7 + $0x84] ss:$8 sps:$4 sm:$0xff]  }
  0x52   :  { %375 = vmatpush1.bf16.msra.mxu1 %v728_v10  ;;  %v749_v24 = vld [vmem:[#allocation7 + $0x80] ss:$8 sps:$4 sm:$0xff]   ;;  %v750_v25 = vld [vmem:[#allocation7 + $0x94] ss:$8 sps:$4 sm:$0xff]   ;;  %v752_v26 = vld [vmem:[#allocation7 + $0x90] ss:$8 sps:$4 sm:$0xff]  }
  0x53   :  { %635 = vmatmul.mubr.msk.bf16.vlgmr.msra.gmra.mrb[0].mxu0 %vm119_vm0, %v82_v9  ;;  %376 = vmatprep.subr.bf16.mxu1 %v729_v11  ;;  %v753_v27 = vld [vmem:[#allocation7 + $0xa4] ss:$8 sps:$4 sm:$0xff]   ;;  %v755_v28 = vld [vmem:[#allocation7 + $0xa0] ss:$8 sps:$4 sm:$0xff]   ;;  %v756_v29 = vld [vmem:[#allocation7 + $0xb4] ss:$8 sps:$4 sm:$0xff]  }
  0x54   :  { %v758_v30 = vld [vmem:[#allocation7 + $0xb0] ss:$8 sps:$4 sm:$0xff]   ;;  %v759_v31 = vld [vmem:[#allocation7 + $0xc4] ss:$8 sps:$4 sm:$0xff]   ;;  %v761_v32 = vld [vmem:[#allocation7 + $0xc0] ss:$8 sps:$4 sm:$0xff]  }
  0x55   :  { %v762_v33 = vld [vmem:[#allocation7 + $0xd4] ss:$8 sps:$4 sm:$0xff]   ;;  %v764_v34 = vld [vmem:[#allocation7 + $0xd0] ss:$8 sps:$4 sm:$0xff]   ;;  %v765_v35 = vld [vmem:[#allocation7 + $0xe4] ss:$8 sps:$4 sm:$0xff]  }
  0x56   :  { %377 = vmatpush1.bf16.msra.mxu1 %v731_v12  ;;  %v767_v36 = vld [vmem:[#allocation7 + $0xe0] ss:$8 sps:$4 sm:$0xff]   ;;  %v768_v37 = vld [vmem:[#allocation7 + $0xf4] ss:$8 sps:$4 sm:$0xff]   ;;  %v770_v38 = vld [vmem:[#allocation7 + $0xf0] ss:$8 sps:$4 sm:$0xff]  }
  0x57   :  { %378 = vmatprep.subr.bf16.mxu1 %v732_v13  ;;  %v771_v39 = vld [vmem:[#allocation8 + $0x40] sm:$0xff]   ;;  %v773_v41 = vld [vmem:[#allocation8 + $0x48] sm:$0xff]   ;;  %v775_v43 = vld [vmem:[#allocation8 + $0x50] sm:$0xff]   ;;  %v91_v53 = vsub.s32 0, %v90_v52  ;;  %v95_v55 = vsub.s32 1, %v90_v52 }
  0x58   :  { %v772_v40 = vld [vmem:[#allocation8] sm:$0xff]   ;;  %685 = vmatprep.subr.bf16.mxu0 %v771_v39  ;;  %v774_v42 = vld [vmem:[#allocation8 + $0x8] sm:$0xff]   ;;  %v776_v44 = vld [vmem:[#allocation8 + $0x10] sm:$0xff]  }
  0x59   :  { %686 = vmatpush3.bf16.msra.mxu0 %v772_v40  ;;  %v777_v45 = vld [vmem:[#allocation8 + $0x58] sm:$0xff]   ;;  %v779_v47 = vld [vmem:[#allocation8 + $0x60] sm:$0xff]   ;;  %v781_v49 = vld [vmem:[#allocation8 + $0x68] sm:$0xff]  }
  0x5a   :  { %379 = vmatpush1.bf16.msra.mxu1 %v734_v14  ;;  %687 = vmatprep.subr.bf16.mxu0 %v773_v41  ;;  %v778_v46 = vld [vmem:[#allocation8 + $0x18] sm:$0xff]   ;;  %v780_v48 = vld [vmem:[#allocation8 + $0x20] sm:$0xff]   ;;  %v782_v50 = vld [vmem:[#allocation8 + $0x28] sm:$0xff]  }
  0x5b   :  { %380 = vmatprep.subr.bf16.mxu1 %v735_v15  ;;  %v87_v54 = vld [vmem:[%s1038_s2] sm:$0x3]  ;;  %v783_v4 = vld [vmem:[#allocation8 + $0x70] sm:$0xff]  }
  0x5c   :  { %v92_v56 = vrot.slane %v87_v54, %v91_v53  ;;  %v96_v57 = vrot.slane %v87_v54, %v95_v55  ;;  %v784_v5 = vld [vmem:[#allocation8 + $0x30] sm:$0xff]   ;;  %v785_v6 = vld [vmem:[#allocation8 + $0x78] sm:$0xff]  }
  0x5d   :  { %688 = vmatpush3.bf16.msra.mxu0 %v774_v42  ;;  %v786_v7 = vld [vmem:[#allocation8 + $0x38] sm:$0xff]  }
  0x5e   :  { %381 = vmatpush1.bf16.msra.mxu1 %v737_v16  ;;  %689 = vmatprep.subr.bf16.mxu0 %v775_v43  ;;  %v200_v8 = vld [vmem:[%s1040_s4] sm:$0x3]  ;;  %s920_s4 = smov [#allocation10]  }
  0x5f   :  { %382 = vmatprep.subr.bf16.mxu1 %v738_v17  ;;  %v205_v9 = vrot.slane %v200_v8, %v91_v53  ;;  %v209_v10 = vrot.slane %v200_v8, %v95_v55 }
  0x61   :  { %690 = vmatpush3.bf16.msra.mxu0 %v776_v44 }
  0x62   :  { %383 = vmatpush1.bf16.msra.mxu1 %v740_v18  ;;  %691 = vmatprep.subr.bf16.mxu0 %v777_v45 }
  0x63   :  { %384 = vmatprep.subr.bf16.mxu1 %v741_v19 }
  0x65   :  { %692 = vmatpush3.bf16.msra.mxu0 %v778_v46 }
  0x66   :  { %385 = vmatpush1.bf16.msra.mxu1 %v743_v20  ;;  %693 = vmatprep.subr.bf16.mxu0 %v779_v47 }
  0x67   :  { %386 = vmatprep.subr.bf16.mxu1 %v744_v21 }
  0x69   :  { %694 = vmatpush3.bf16.msra.mxu0 %v780_v48 }
  0x6a   :  { %387 = vmatpush1.bf16.msra.mxu1 %v746_v22  ;;  %695 = vmatprep.subr.bf16.mxu0 %v781_v49  ;;  %v668_v22 = vld [vmem:[%s1042_s6] ss:$0 sm:$0xff]  ;;  %s620_s6 = sshll.u32 %s920_s4, 4  ;;  %s621_s6 = int_to_ptr.vmem [resolvable:$true] %s620_s6 }
  0x6b   :  { %388 = vmatprep.subr.bf16.mxu1 %v747_v23  ;;  %s881_s30 = scalar_lea.vmem %s621_s6, 128  ;;  %p886_p5 = scmp.lt.s32.totalorder %s621_s6, %s621_s6 }
  0x6c   :  { %p882_p4 = scmp.ne.s32.totalorder %s621_s6, %s881_s30  ;;  %p887_p6 = scmp.lt.s32.totalorder %s881_s30, %s881_s30 }
  0x6d   :  { %696 = vmatpush3.bf16.msra.mxu0 %v782_v50 }
  0x6e   :  { %389 = vmatpush1.bf16.msra.mxu1 %v749_v24  ;;  %697 = vmatprep.subr.bf16.mxu0 %v783_v4  ;;  %p888_p7 = por %p887_p6, %p886_p5 }
  0x6f   :  { %390 = vmatprep.subr.bf16.mxu1 %v750_v25 }
  0x70   :  { %p889_p8 = pnand %p888_p7, %p882_p4 }
  0x71   :  { %698 = vmatpush3.bf16.msra.mxu0 %v784_v5 }
  0x72   :  { %391 = vmatpush1.bf16.msra.mxu1 %v752_v26  ;;  %699 = vmatprep.subr.bf16.mxu0 %v785_v6 }
  0x73   :  { %392 = vmatprep.subr.bf16.mxu1 %v753_v27 }
  0x75   :  { %700 = vmatpush3.bf16.msra.mxu0 %v786_v7 }
  0x76   :  { %393 = vmatpush1.bf16.msra.mxu1 %v755_v28 }
  0x77   :  { %394 = vmatprep.subr.bf16.mxu1 %v756_v29 }
  0x7a   :  { %395 = vmatpush1.bf16.msra.mxu1 %v758_v30 }
  0x7b   :  { %396 = vmatprep.subr.bf16.mxu1 %v759_v31 }
  0x7e   :  { %397 = vmatpush1.bf16.msra.mxu1 %v761_v32 }
  0x7f   :  { %398 = vmatprep.subr.bf16.mxu1 %v762_v33 }
  0x82   :  { %399 = vmatpush1.bf16.msra.mxu1 %v764_v34 }
  0x83   :  { %400 = vmatprep.subr.bf16.mxu1 %v765_v35 }
  0x86   :  { %401 = vmatpush1.bf16.msra.mxu1 %v767_v36  ;;  %v593_v36 = vand.u32 127, %v89_v51 }
  0x87   :  { %402 = vmatprep.subr.bf16.mxu1 %v768_v37 }
  0x88   :  { %vm611_vm2 = vcmp.lt.s32.totalorder %v593_v36, 4 }
  0x8a   :  { %403 = vmatpush1.bf16.msra.mxu1 %v770_v38 }
 0x126   :  { %v157_v58 = vpop.f32.mrb[0].mxu0 }
 0x127   :  { %v158_v59 = vadd.f32 %v157_v58, %v92_v56  ;;  %v159_v60 = vpop.f32.mrb[1].mxu0 }
 0x128   :  { %v160_v61 = vadd.f32 %v159_v60, %v96_v57  ;;  %v161_v62 = vpop.f32.mrb[2].mxu0 }
 0x129   :  { %v164_v63 = vmax.f32 %v158_v59, 0.0  ;;  %v162_v0 = vpop.f32.mrb[3].mxu0 }
 0x12a   :  { %v165_v1 = vmax.f32 %v160_v61, 0.0 }
 0x12b   :  { %v166_v3 = vpack.c.bf16 %v164_v63, %v164_v63 }
 0x12c   :  { %v167_v2 = vpack.c.bf16 %v165_v1, %v165_v1 }
 0x12e   :  { %404 = vmatprep.mubr.bf16.mxu1 %v167_v2 }
 0x12f   :  { %405 = vmatmul.mubr.bf16.vlgmr.msra.gmra.mrb[0].mxu1 %v166_v3 }
 0x202   :  { %v406_v11 = vpop.f32.mrb[0].mxu1 }
 0x203   :  { %v407_v12 = vadd.f32 %v406_v11, %v205_v9  ;;  %v408_v13 = vpop.f32.mrb[1].mxu1 }
 0x204   :  { %v409_v14 = vadd.f32 %v408_v13, %v209_v10  ;;  %v410_v15 = vpop.f32.mrb[2].mxu1 }
 0x205   :  { %v413_v16 = vmax.f32 %v407_v12, 0.0  ;;  %v411_v17 = vpop.f32.mrb[3].mxu1 }
 0x206   :  { %v414_v18 = vmax.f32 %v409_v14, 0.0 }
 0x207   :  { %v415_v20 = vpack.c.bf16 %v413_v16, %v413_v16 }
 0x208   :  { %v416_v19 = vpack.c.bf16 %v414_v18, %v414_v18 }
 0x20a   :  { %584 = vmatprep.mubr.bf16.mxu0 %v416_v19 }
 0x20b   :  { %585 = vmatmul.mubr.bf16.vlgmr.msra.gmra.mrb[4].mxu0 %v415_v20 }
 0x2de   :  { %v701_v21 = vpop.f32.mrb[4].mxu0 }
 0x2df   :  { %v702_v23 = vpop.f32.mrb[5].mxu0 }
 0x2e0   :  { %v703_v24 = vadd.f32 %v702_v23, %v701_v21  ;;  %v704_v25 = vpop.f32.mrb[6].mxu0 }
 0x2e1   :  { %v705_v26 = vpop.f32.mrb[7].mxu0 }
 0x2e2   :  { %v587_v27 = vadd.f32 %v703_v24, %v668_v22 }
 0x2e4   :  { %v597_v28 = vand.u32 2147483647, %v587_v27  ;;  %v596_v41 = vmax.f32 %v587_v27, 0.0 }
 0x2e6   :  { %v598_v29 = vsub.f32 0.0, %v597_v28 }
 0x2e8   :  { %v599_v30 = vmul.f32 1.442695, %v598_v29 }
 0x2ea   :  { %787 = vpow2.f32 %v599_v30 }
 0x2f4   :  { %v788_v31 = vpop.eup %787 }
 0x2f5   :  { %v601_v32 = vadd.f32 1.0, %v788_v31  ;;  %v604_v33 = vmul.f32 -0.5, %v788_v31  ;;  %v607_v35 = vand.u32 2147483647, %v788_v31 }
 0x2f7   :  { %789 = vlog2.f32 %v601_v32  ;;  %v605_v34 = vadd.f32 1.0, %v604_v33  ;;  %vm608_vm1 = vcmp.lt.f32.partialorder %v607_v35, 0.0004427343 }
 0x2f8   :  { %791 = vtanh.f32 %v587_v27 }
 0x2f9   :  { %v606_v40 = vmul.f32 %v788_v31, %v605_v34 }
 0x301   :  { %v790_v37 = vpop.eup %789 }
 0x302   :  { %v792_v38 = vpop.eup %791  ;;  %v603_v39 = vmul.f32 0.6931472, %v790_v37 }
 0x303   :  { %v595_v43 = vmul.f32 2.0, %v792_v38 }
 0x304   :  { %v609_v42 = vsel %vm608_vm1, %v606_v40, %v603_v39 }
 0x305   :  { %v610_v44 = vadd.f32 %v609_v42, %v596_v41 }
 0x307   :  { %v612_v45 = vsel %vm611_vm2, %v595_v43, %v610_v44 }
 0x308   :  { %613 = vst [vmem:[#allocation10] sm:$0xff] %v612_v45 }
 0x309   :  { %892 = shalt.err (!%p889_p8)
}
 0x30a   :  { %s893_s10 = scalar_lea.hbm %s1043_s7, 128 }
 0x30b   :  { %p894_p9 = scmp.ne.s32.totalorder %s1043_s7, %s893_s10  ;;  %p897_p10 = scmp.lt.u32.totalorder %s893_s10, %s1043_s7 }
 0x30d   :  { %p899_p11 = pnand %p897_p10, %p894_p9 }
 0x30f   :  { %902 = shalt.err (!%p899_p11)
}
 0x310   :  { %623 = dma.vmem_to_hbm [thread:$0]  %s621_s6, 128, %s1043_s7, [#allocation4]  }
 0x311   :  { %909 = dma.done.wait [#allocation4], 128  }
 0x312   :  { %910 = vsyncadd [#allocation4], 4294967168 }
 0x313   :  { %627 = vsyncpa [#allocation3], 1 }
 0x314   :  { %628 = vsyncpa [#allocation6], 1 }
 0x315   :  { %629 = vsyncpa [#allocation9], 1 }
 0x316   :  { %630 = vsyncpa [#allocation4], 1 }

</bundles_post_ra>
